<compile_context>
chip_gen: v7x
topology: tpu7x:2x2x1
jax: 0.10.0
libtpu: 0.0.40
codegen_flags: <defaults>
</compile_context>

<pallas_src>
import functools

import jax
import jax.numpy as jnp
from jax.experimental import pallas as pl
from jax.experimental.pallas import tpu as pltpu

STATE_DIM = 8    # fixed by the `+ 8` in the PyTorch Linear layers
LANE = 128       # TPU lane width


def _round_up(x, m):
    return (x + m - 1) // m * m


# --------------------------------------------------------------------------
# Kernel
# --------------------------------------------------------------------------
def cvae_kernel(action_ref, state_ref, noise_ref,
                e1ws_ref, e1wa_ref, e1b_ref,
                e2w_ref, e2b_ref,
                mvw_ref, mvb_ref,
                d1ws_ref, d1wz_ref, d1b_ref,
                d2w_ref, d2b_ref,
                ow_ref, ob_ref,
                out_ref, *, lat_pad, gen_pad):
    """One batch tile of the CVAE forward (encoder -> reparam -> decoder)."""
    f32 = jnp.float32
    wdt = e2w_ref.dtype  # matmul operand dtype (bf16 by default, f32 for checks)

    def mm(x, w_ref):
        # MXU matmul with f32 accumulation; operands already in weight dtype.
        return jnp.dot(x, w_ref[...], preferred_element_type=f32)

    state = state_ref[...]
    action = action_ref[...]
    state_w = state.astype(wdt)       # cast once, reused by e1 and d1

    # ---- Encoder: relu(e1(cat(state, action))) without a lane concat -------
    h = mm(state_w, e1ws_ref) + mm(action.astype(wdt), e1wa_ref) + e1b_ref[...]
    h = jnp.maximum(h, 0.0)                                       # relu(e1)
    h = jnp.maximum(mm(h.astype(wdt), e2w_ref) + e2b_ref[...], 0.0)  # relu(e2)

    # ---- Fused, 128-lane-aligned mu / log_var head --------------------------
    mv = mm(h.astype(wdt), mvw_ref) + mvb_ref[...]   # [ mu | log_var ], each lat_pad wide
    mu = mv[:, :lat_pad]                             # vreg-aligned slice
    log_var = mv[:, lat_pad:]                        # vreg-aligned slice

    # ---- Reparameterize: z = clamp(mu + exp(log_var) * eps, -1, 1) ----------
    # (matches PyTorch: exp(log_var), no log_var clamp)
    z = jnp.clip(mu + jnp.exp(log_var) * noise_ref[...], -1.0, 1.0)

    # ---- Decoder: d1(cat(state, z)) split into two matmuls ------------------
    d = mm(state_w, d1ws_ref) + mm(z.astype(wdt), d1wz_ref) + d1b_ref[...]
    d = jnp.maximum(d, 0.0)                                        # relu(d1)
    d = jnp.maximum(mm(d.astype(wdt), d2w_ref) + d2b_ref[...], 0.0)  # relu(d2)
    gen = jnp.tanh(mm(d.astype(wdt), ow_ref) + ob_ref[...])        # tanh(out), gen_pad lanes

    # ---- Two direct, 128-lane-aligned stores (no value-level concat) --------
    out_ref[:, :gen_pad] = gen     # lanes [0, gen_pad)
    out_ref[:, gen_pad:] = mv      # lanes [gen_pad, gen_pad + 2*lat_pad)


# --------------------------------------------------------------------------
# Parameter construction (PyTorch-faithful) + one-time kernel-layout prep
# --------------------------------------------------------------------------
def _linear_init(key, fan_in, fan_out):
    """nn.Linear default init: U(-k, k), k = 1/sqrt(fan_in). Weight returned
    pre-transposed as (fan_in, fan_out); bias as (1, fan_out)."""
    kw, kb = jax.random.split(key)
    bound = 1.0 / jnp.sqrt(jnp.asarray(fan_in, jnp.float32))
    w = jax.random.uniform(kw, (fan_in, fan_out), jnp.float32, -bound, bound)
    b = jax.random.uniform(kb, (1, fan_out), jnp.float32, -bound, bound)
    return w, b


def make_params(key, input_dim, hidden_dim, latent_dim):
    keys = jax.random.split(key, 7)
    p = {}
    p["e1w"], p["e1b"] = _linear_init(keys[0], input_dim + STATE_DIM, hidden_dim[0])
    p["e2w"], p["e2b"] = _linear_init(keys[1], hidden_dim[0], hidden_dim[1])
    p["muw"], p["mub"] = _linear_init(keys[2], hidden_dim[1], latent_dim)
    p["varw"], p["varb"] = _linear_init(keys[3], hidden_dim[1], latent_dim)
    p["d1w"], p["d1b"] = _linear_init(keys[4], latent_dim + STATE_DIM, hidden_dim[1])
    p["d2w"], p["d2b"] = _linear_init(keys[5], hidden_dim[1], hidden_dim[0])
    p["ow"], p["ob"] = _linear_init(keys[6], hidden_dim[0], input_dim)
    return p


def prepare_weights(params, input_dim, hidden_dim, latent_dim,
                    weight_dtype=jnp.bfloat16):
    """One-time layout prep: split concat-weights, fuse+pad mu/var to 2*128
    lanes, pad the output head to 128 lanes, cast matmul weights (biases f32)."""
    lat_pad = _round_up(latent_dim, LANE)
    gen_pad = _round_up(input_dim, LANE)

    def pad_cols(w, n):
        return jnp.pad(w, ((0, 0), (0, n - w.shape[1])))

    e1ws, e1wa = params["e1w"][:STATE_DIM], params["e1w"][STATE_DIM:]
    mvw = jnp.concatenate([pad_cols(params["muw"], lat_pad),
                           pad_cols(params["varw"], lat_pad)], axis=1)
    mvb = jnp.concatenate([pad_cols(params["mub"], lat_pad),
                           pad_cols(params["varb"], lat_pad)], axis=1)
    d1ws = params["d1w"][:STATE_DIM]
    d1wz = jnp.pad(params["d1w"][STATE_DIM:],
                   ((0, lat_pad - latent_dim), (0, 0)))
    ow = pad_cols(params["ow"], gen_pad)
    ob = pad_cols(params["ob"], gen_pad)

    wcast = lambda w: w.astype(weight_dtype)
    fcast = lambda b: b.astype(jnp.float32)
    weights = (
        wcast(e1ws), wcast(e1wa), fcast(params["e1b"]),
        wcast(params["e2w"]), fcast(params["e2b"]),
        wcast(mvw), fcast(mvb),
        wcast(d1ws), wcast(d1wz), fcast(params["d1b"]),
        wcast(params["d2w"]), fcast(params["d2b"]),
        wcast(ow), fcast(ob),
    )
    return jax.tree_util.tree_map(jax.block_until_ready, weights)


# --------------------------------------------------------------------------
# Tiling plan + forward wrapper
# --------------------------------------------------------------------------
def _plan_tiles(B, input_dim, lat_pad, gen_pad, hidden_dim, weights,
                max_tile=1024, vmem_budget=40 << 20):
    """Pick a batch tile: multiple of 8, >=2 grid steps when possible (v7x
    megacore), fits an explicit VMEM budget.  Returns (tb, padded_B, vmem_limit)."""
    h0, h1 = hidden_dim
    out_dim = gen_pad + 2 * lat_pad
    w_bytes = sum(int(w.size) * w.dtype.itemsize for w in weights)  # single-buffered

    def tile_bytes(tb):
        stream = 2 * tb * (input_dim + STATE_DIM + lat_pad + out_dim) * 4  # dbl-buffered IO
        inter = tb * (h0 + 2 * h1 + 2 * lat_pad + gen_pad) * 4             # live f32 temps
        return w_bytes + stream + inter

    tb = min(max_tile, max(8, _round_up((B + 1) // 2, 8)))  # aim for >=2 steps
    tb = max(8, _round_up(min(tb, B), 8))
    while tb > 8 and tile_bytes(tb) > vmem_budget:
        tb = max(8, _round_up(tb // 2, 8))
    b_pad = _round_up(B, tb)
    vmem_limit = max(32 << 20, int(tile_bytes(tb) * 3 // 2))
    vmem_limit = min(vmem_limit, 56 << 20)   # stay below v7x's 64 MiB physical
    return tb, b_pad, vmem_limit


def cvae_forward(action, state, noise, weights, *, input_dim, hidden_dim,
                 latent_dim):
    """action: (B, input_dim), state: (B, 8), noise: (B, latent_dim) ~ N(0,1).
    `weights` comes from prepare_weights() (cast/padded once, reused per call)."""
    B = action.shape[0]
    lat_pad = _round_up(latent_dim, LANE)
    gen_pad = _round_up(input_dim, LANE)
    out_dim = gen_pad + 2 * lat_pad

    action = action.astype(jnp.float32)
    state = state.astype(jnp.float32)
    noise = jnp.pad(noise.astype(jnp.float32),
                    ((0, 0), (0, lat_pad - latent_dim)))

    tb, b_pad, vmem_limit = _plan_tiles(B, input_dim, lat_pad, gen_pad,
                                        hidden_dim, weights)
    if b_pad != B:
        padB = lambda x: jnp.pad(x, ((0, b_pad - B), (0, 0)))
        action, state, noise = padB(action), padB(state), padB(noise)
    grid = (b_pad // tb,)

    def stream_spec(feat):
        # Activations / outputs stream over the batch grid.
        return pl.BlockSpec((tb, feat), lambda i: (i, 0))

    # Weights: whole array resident in VMEM, fetched once, no double-buffer.
    resident = pl.BlockSpec(memory_space=pltpu.MemorySpace.VMEM)
    in_specs = ([stream_spec(input_dim), stream_spec(STATE_DIM),
                 stream_spec(lat_pad)] + [resident] * len(weights))

    h0, h1 = hidden_dim
    flops = 2 * b_pad * (STATE_DIM * h0 + input_dim * h0      # e1
                         + h0 * h1                            # e2
                         + h1 * 2 * lat_pad                   # mu/log_var head
                         + STATE_DIM * h1 + lat_pad * h1      # d1
                         + h1 * h0                            # d2
                         + h0 * gen_pad)                      # hidden_to_out
    transcendentals = b_pad * (lat_pad + gen_pad)             # exp + tanh
    bytes_accessed = (sum(int(w.size) * w.dtype.itemsize for w in weights)
                      + b_pad * (input_dim + STATE_DIM + lat_pad) * 4
                      + b_pad * out_dim * 4)

    out = pl.pallas_call(
        functools.partial(cvae_kernel, lat_pad=lat_pad, gen_pad=gen_pad),
        out_shape=jax.ShapeDtypeStruct((b_pad, out_dim), jnp.float32),
        grid=grid,
        in_specs=in_specs,
        out_specs=pl.BlockSpec((tb, out_dim), lambda i: (i, 0)),
        compiler_params=pltpu.CompilerParams(
            dimension_semantics=("parallel",),
            vmem_limit_bytes=vmem_limit),
        cost_estimate=pl.CostEstimate(flops=flops,
                                      transcendentals=transcendentals,
                                      bytes_accessed=bytes_accessed),
    )(action, state, noise, *weights)

    generated_action = out[:B, :input_dim]
    z_mu = out[:B, gen_pad:gen_pad + latent_dim]
    z_var = out[:B, gen_pad + lat_pad:gen_pad + lat_pad + latent_dim]
    return generated_action, z_mu, z_var


# --------------------------------------------------------------------------
# Pure-JAX reference (mirrors the PyTorch CVAE forward)
# --------------------------------------------------------------------------
def cvae_reference(action, state, noise, params):
    sa = jnp.concatenate([state, action], axis=1)
    h = jax.nn.relu(sa @ params["e1w"] + params["e1b"])
    h = jax.nn.relu(h @ params["e2w"] + params["e2b"])
    mu = h @ params["muw"] + params["mub"]
    log_var = h @ params["varw"] + params["varb"]
    z = jnp.clip(mu + jnp.exp(log_var) * noise, -1.0, 1.0)
    zi = jnp.concatenate([state, z], axis=1)
    d = jax.nn.relu(zi @ params["d1w"] + params["d1b"])
    d = jax.nn.relu(d @ params["d2w"] + params["d2b"])
    gen = jnp.tanh(d @ params["ow"] + params["ob"])
    return gen, mu, log_var


if __name__ == "__main__":
    # Small shapes consistent with the module: state dim fixed at 8 by the
    # `+ 8` in the Linear layers; action dim == input_dim (reconstruction).
    B = 8
    input_dim = 16
    hidden_dim = [32, 32]
    latent_dim = 8

    key = jax.random.PRNGKey(0)
    k_params, k_action, k_state, k_noise = jax.random.split(key, 4)

    params = make_params(k_params, input_dim, hidden_dim, latent_dim)
    action = jax.random.normal(k_action, (B, input_dim), jnp.float32)
    state = jax.random.normal(k_state, (B, STATE_DIM), jnp.float32)
    noise = jax.random.normal(k_noise, (B, latent_dim), jnp.float32)  # randn_like

    rgen, rmu, rvar = cvae_reference(action, state, noise, params)

    # 1) f32-weight path: structural correctness vs. pure-JAX reference.
    w_f32 = prepare_weights(params, input_dim, hidden_dim, latent_dim,
                            weight_dtype=jnp.float32)
    gen32, mu32, var32 = cvae_forward(action, state, noise, w_f32,
                                      input_dim=input_dim,
                                      hidden_dim=hidden_dim,
                                      latent_dim=latent_dim)
    jax.block_until_ready((gen32, mu32, var32))
    assert jnp.allclose(gen32, rgen, atol=2e-2, rtol=2e-2)
    assert jnp.allclose(mu32, rmu, atol=2e-2, rtol=2e-2)
    assert jnp.allclose(var32, rvar, atol=2e-2, rtol=2e-2)

    # 2) Default bf16-weight path (weights cast/padded once, reused per call).
    w_bf16 = prepare_weights(params, input_dim, hidden_dim, latent_dim)
    generated_action, z_mu, z_var = cvae_forward(action, state, noise, w_bf16,
                                                 input_dim=input_dim,
                                                 hidden_dim=hidden_dim,
                                                 latent_dim=latent_dim)
    jax.block_until_ready((generated_action, z_mu, z_var))

    assert generated_action.shape == (B, input_dim)
    assert z_mu.shape == (B, latent_dim)
    assert z_var.shape == (B, latent_dim)
    # Numerical check of the bf16 path with bf16-appropriate tolerances.
    assert jnp.allclose(generated_action, rgen, atol=6e-2, rtol=6e-2)
    assert jnp.allclose(z_mu, rmu, atol=6e-2, rtol=6e-2)
    assert jnp.allclose(z_var, rvar, atol=6e-2, rtol=6e-2)
    assert bool(jnp.all(jnp.isfinite(generated_action)))
    assert bool(jnp.all(jnp.isfinite(z_mu))) and bool(jnp.all(jnp.isfinite(z_var)))
    print("KERNEL_OK")
</pallas_src>

<mosaic_0001>
module attributes {stable_mosaic.version = 11 : i64} {
  func.func @cvae_kernel(%arg0: i32, %arg1: memref<8x16xf32, #tpu.memory_space<vmem>>, %arg2: memref<8x8xf32, #tpu.memory_space<vmem>>, %arg3: memref<8x128xf32, #tpu.memory_space<vmem>>, %arg4: memref<8x32xf32, #tpu.memory_space<vmem>>, %arg5: memref<16x32xf32, #tpu.memory_space<vmem>>, %arg6: memref<1x32xf32, #tpu.memory_space<vmem>>, %arg7: memref<32x32xf32, #tpu.memory_space<vmem>>, %arg8: memref<1x32xf32, #tpu.memory_space<vmem>>, %arg9: memref<32x256xf32, #tpu.memory_space<vmem>>, %arg10: memref<1x256xf32, #tpu.memory_space<vmem>>, %arg11: memref<8x32xf32, #tpu.memory_space<vmem>>, %arg12: memref<128x32xf32, #tpu.memory_space<vmem>>, %arg13: memref<1x32xf32, #tpu.memory_space<vmem>>, %arg14: memref<32x32xf32, #tpu.memory_space<vmem>>, %arg15: memref<1x32xf32, #tpu.memory_space<vmem>>, %arg16: memref<32x128xf32, #tpu.memory_space<vmem>>, %arg17: memref<1x128xf32, #tpu.memory_space<vmem>>, %arg18: memref<8x384xf32, #tpu.memory_space<vmem>>) attributes {dimension_semantics = [#tpu.dimension_semantics<parallel>], iteration_bounds = array<i64: 1>, scalar_prefetch = 0 : i64, scratch_operands = 0 : i64, tpu.core_type = #tpu.core_type<tc>, window_params = [{transform_indices = @transform_0, window_bounds = array<i64: 8, 16>}, {transform_indices = @transform_1, window_bounds = array<i64: 8, 8>}, {transform_indices = @transform_2, window_bounds = array<i64: 8, 128>}, {pipeline_mode = #tpu.pipeline_mode<synchronous>, transform_indices = @transform_3, window_bounds = array<i64: 8, 32>}, {pipeline_mode = #tpu.pipeline_mode<synchronous>, transform_indices = @transform_4, window_bounds = array<i64: 16, 32>}, {pipeline_mode = #tpu.pipeline_mode<synchronous>, transform_indices = @transform_5, window_bounds = array<i64: 1, 32>}, {pipeline_mode = #tpu.pipeline_mode<synchronous>, transform_indices = @transform_6, window_bounds = array<i64: 32, 32>}, {pipeline_mode = #tpu.pipeline_mode<synchronous>, transform_indices = @transform_7, window_bounds = array<i64: 1, 32>}, {pipeline_mode = #tpu.pipeline_mode<synchronous>, transform_indices = @transform_8, window_bounds = array<i64: 32, 256>}, {pipeline_mode = #tpu.pipeline_mode<synchronous>, transform_indices = @transform_9, window_bounds = array<i64: 1, 256>}, {pipeline_mode = #tpu.pipeline_mode<synchronous>, transform_indices = @transform_10, window_bounds = array<i64: 8, 32>}, {pipeline_mode = #tpu.pipeline_mode<synchronous>, transform_indices = @transform_11, window_bounds = array<i64: 128, 32>}, {pipeline_mode = #tpu.pipeline_mode<synchronous>, transform_indices = @transform_12, window_bounds = array<i64: 1, 32>}, {pipeline_mode = #tpu.pipeline_mode<synchronous>, transform_indices = @transform_13, window_bounds = array<i64: 32, 32>}, {pipeline_mode = #tpu.pipeline_mode<synchronous>, transform_indices = @transform_14, window_bounds = array<i64: 1, 32>}, {pipeline_mode = #tpu.pipeline_mode<synchronous>, transform_indices = @transform_15, window_bounds = array<i64: 32, 128>}, {pipeline_mode = #tpu.pipeline_mode<synchronous>, transform_indices = @transform_16, window_bounds = array<i64: 1, 128>}, {transform_indices = @transform_17, window_bounds = array<i64: 8, 384>}]} {
    %c0 = arith.constant 0 : index
    %c0_0 = arith.constant 0 : index
    %0 = vector.load %arg2[%c0, %c0_0] : memref<8x8xf32, #tpu.memory_space<vmem>>, vector<8x8xf32>
    %c0_1 = arith.constant 0 : index
    %c0_2 = arith.constant 0 : index
    %1 = vector.load %arg1[%c0_1, %c0_2] : memref<8x16xf32, #tpu.memory_space<vmem>>, vector<8x16xf32>
    %c0_3 = arith.constant 0 : index
    %c0_4 = arith.constant 0 : index
    %2 = vector.load %arg4[%c0_3, %c0_4] : memref<8x32xf32, #tpu.memory_space<vmem>>, vector<8x32xf32>
    %cst = arith.constant dense<0.000000e+00> : vector<8x32xf32>
    %3 = tpu.matmul %0, %2, %cst {dimension_numbers = #tpu.dot_dimension_numbers<[1], [0], [0], [1], [0, 0, 1, 1], [], []>} : vector<8x8xf32>, vector<8x32xf32>, vector<8x32xf32> -> vector<8x32xf32>
    %c0_5 = arith.constant 0 : index
    %c0_6 = arith.constant 0 : index
    %4 = vector.load %arg5[%c0_5, %c0_6] : memref<16x32xf32, #tpu.memory_space<vmem>>, vector<16x32xf32>
    %cst_7 = arith.constant dense<0.000000e+00> : vector<8x32xf32>
    %5 = tpu.matmul %1, %4, %cst_7 {dimension_numbers = #tpu.dot_dimension_numbers<[1], [0], [0], [1], [0, 0, 1, 1], [], []>} : vector<8x16xf32>, vector<16x32xf32>, vector<8x32xf32> -> vector<8x32xf32>
    %6 = arith.addf %3, %5 : vector<8x32xf32>
    %c0_8 = arith.constant 0 : index
    %c0_9 = arith.constant 0 : index
    %7 = vector.load %arg6[%c0_8, %c0_9] : memref<1x32xf32, #tpu.memory_space<vmem>>, vector<1x32xf32>
    %8 = vector.broadcast %7 : vector<1x32xf32> to vector<8x32xf32>
    %9 = arith.addf %6, %8 : vector<8x32xf32>
    %cst_10 = arith.constant 0.000000e+00 : f32
    %10 = vector.broadcast %cst_10 : f32 to vector<8x32xf32>
    %11 = arith.maximumf %9, %10 : vector<8x32xf32>
    %c0_11 = arith.constant 0 : index
    %c0_12 = arith.constant 0 : index
    %12 = vector.load %arg7[%c0_11, %c0_12] : memref<32x32xf32, #tpu.memory_space<vmem>>, vector<32x32xf32>
    %cst_13 = arith.constant dense<0.000000e+00> : vector<8x32xf32>
    %13 = tpu.matmul %11, %12, %cst_13 {dimension_numbers = #tpu.dot_dimension_numbers<[1], [0], [0], [1], [0, 0, 1, 1], [], []>} : vector<8x32xf32>, vector<32x32xf32>, vector<8x32xf32> -> vector<8x32xf32>
    %c0_14 = arith.constant 0 : index
    %c0_15 = arith.constant 0 : index
    %14 = vector.load %arg8[%c0_14, %c0_15] : memref<1x32xf32, #tpu.memory_space<vmem>>, vector<1x32xf32>
    %15 = vector.broadcast %14 : vector<1x32xf32> to vector<8x32xf32>
    %16 = arith.addf %13, %15 : vector<8x32xf32>
    %cst_16 = arith.constant 0.000000e+00 : f32
    %17 = vector.broadcast %cst_16 : f32 to vector<8x32xf32>
    %18 = arith.maximumf %16, %17 : vector<8x32xf32>
    %c0_17 = arith.constant 0 : index
    %c0_18 = arith.constant 0 : index
    %19 = vector.load %arg9[%c0_17, %c0_18] : memref<32x256xf32, #tpu.memory_space<vmem>>, vector<32x256xf32>
    %cst_19 = arith.constant dense<0.000000e+00> : vector<8x256xf32>
    %20 = tpu.matmul %18, %19, %cst_19 {dimension_numbers = #tpu.dot_dimension_numbers<[1], [0], [0], [1], [0, 0, 1, 1], [], []>} : vector<8x32xf32>, vector<32x256xf32>, vector<8x256xf32> -> vector<8x256xf32>
    %c0_20 = arith.constant 0 : index
    %c0_21 = arith.constant 0 : index
    %21 = vector.load %arg10[%c0_20, %c0_21] : memref<1x256xf32, #tpu.memory_space<vmem>>, vector<1x256xf32>
    %22 = vector.broadcast %21 : vector<1x256xf32> to vector<8x256xf32>
    %23 = arith.addf %20, %22 : vector<8x256xf32>
    %24 = vector.extract_strided_slice %23 {offsets = [0, 0], sizes = [8, 128], strides = [1, 1]} : vector<8x256xf32> to vector<8x128xf32>
    %25 = vector.extract_strided_slice %23 {offsets = [0, 128], sizes = [8, 128], strides = [1, 1]} : vector<8x256xf32> to vector<8x128xf32>
    %26 = math.exp %25 : vector<8x128xf32>
    %c0_22 = arith.constant 0 : index
    %c0_23 = arith.constant 0 : index
    %27 = vector.load %arg3[%c0_22, %c0_23] : memref<8x128xf32, #tpu.memory_space<vmem>>, vector<8x128xf32>
    %28 = arith.mulf %26, %27 : vector<8x128xf32>
    %29 = arith.addf %24, %28 : vector<8x128xf32>
    %cst_24 = arith.constant -1.000000e+00 : f32
    %cst_25 = arith.constant 1.000000e+00 : f32
    %30 = vector.broadcast %cst_24 : f32 to vector<8x128xf32>
    %31 = arith.maximumf %30, %29 : vector<8x128xf32>
    %32 = vector.broadcast %cst_25 : f32 to vector<8x128xf32>
    %33 = arith.minimumf %32, %31 : vector<8x128xf32>
    %c0_26 = arith.constant 0 : index
    %c0_27 = arith.constant 0 : index
    %34 = vector.load %arg11[%c0_26, %c0_27] : memref<8x32xf32, #tpu.memory_space<vmem>>, vector<8x32xf32>
    %cst_28 = arith.constant dense<0.000000e+00> : vector<8x32xf32>
    %35 = tpu.matmul %0, %34, %cst_28 {dimension_numbers = #tpu.dot_dimension_numbers<[1], [0], [0], [1], [0, 0, 1, 1], [], []>} : vector<8x8xf32>, vector<8x32xf32>, vector<8x32xf32> -> vector<8x32xf32>
    %c0_29 = arith.constant 0 : index
    %c0_30 = arith.constant 0 : index
    %36 = vector.load %arg12[%c0_29, %c0_30] : memref<128x32xf32, #tpu.memory_space<vmem>>, vector<128x32xf32>
    %cst_31 = arith.constant dense<0.000000e+00> : vector<8x32xf32>
    %37 = tpu.matmul %33, %36, %cst_31 {dimension_numbers = #tpu.dot_dimension_numbers<[1], [0], [0], [1], [0, 0, 1, 1], [], []>} : vector<8x128xf32>, vector<128x32xf32>, vector<8x32xf32> -> vector<8x32xf32>
    %38 = arith.addf %35, %37 : vector<8x32xf32>
    %c0_32 = arith.constant 0 : index
    %c0_33 = arith.constant 0 : index
    %39 = vector.load %arg13[%c0_32, %c0_33] : memref<1x32xf32, #tpu.memory_space<vmem>>, vector<1x32xf32>
    %40 = vector.broadcast %39 : vector<1x32xf32> to vector<8x32xf32>
    %41 = arith.addf %38, %40 : vector<8x32xf32>
    %cst_34 = arith.constant 0.000000e+00 : f32
    %42 = vector.broadcast %cst_34 : f32 to vector<8x32xf32>
    %43 = arith.maximumf %41, %42 : vector<8x32xf32>
    %c0_35 = arith.constant 0 : index
    %c0_36 = arith.constant 0 : index
    %44 = vector.load %arg14[%c0_35, %c0_36] : memref<32x32xf32, #tpu.memory_space<vmem>>, vector<32x32xf32>
    %cst_37 = arith.constant dense<0.000000e+00> : vector<8x32xf32>
    %45 = tpu.matmul %43, %44, %cst_37 {dimension_numbers = #tpu.dot_dimension_numbers<[1], [0], [0], [1], [0, 0, 1, 1], [], []>} : vector<8x32xf32>, vector<32x32xf32>, vector<8x32xf32> -> vector<8x32xf32>
    %c0_38 = arith.constant 0 : index
    %c0_39 = arith.constant 0 : index
    %46 = vector.load %arg15[%c0_38, %c0_39] : memref<1x32xf32, #tpu.memory_space<vmem>>, vector<1x32xf32>
    %47 = vector.broadcast %46 : vector<1x32xf32> to vector<8x32xf32>
    %48 = arith.addf %45, %47 : vector<8x32xf32>
    %cst_40 = arith.constant 0.000000e+00 : f32
    %49 = vector.broadcast %cst_40 : f32 to vector<8x32xf32>
    %50 = arith.maximumf %48, %49 : vector<8x32xf32>
    %c0_41 = arith.constant 0 : index
    %c0_42 = arith.constant 0 : index
    %51 = vector.load %arg16[%c0_41, %c0_42] : memref<32x128xf32, #tpu.memory_space<vmem>>, vector<32x128xf32>
    %cst_43 = arith.constant dense<0.000000e+00> : vector<8x128xf32>
    %52 = tpu.matmul %50, %51, %cst_43 {dimension_numbers = #tpu.dot_dimension_numbers<[1], [0], [0], [1], [0, 0, 1, 1], [], []>} : vector<8x32xf32>, vector<32x128xf32>, vector<8x128xf32> -> vector<8x128xf32>
    %c0_44 = arith.constant 0 : index
    %c0_45 = arith.constant 0 : index
    %53 = vector.load %arg17[%c0_44, %c0_45] : memref<1x128xf32, #tpu.memory_space<vmem>>, vector<1x128xf32>
    %54 = vector.broadcast %53 : vector<1x128xf32> to vector<8x128xf32>
    %55 = arith.addf %52, %54 : vector<8x128xf32>
    %56 = math.tanh %55 : vector<8x128xf32>
    %c0_46 = arith.constant 0 : index
    %c0_47 = arith.constant 0 : index
    %57 = vector.load %arg18[%c0_46, %c0_47] : memref<8x384xf32, #tpu.memory_space<vmem>>, vector<8x128xf32>
    tpu.vector_store %arg18[%c0_46, %c0_47], %56 {strides = array<i32>} : memref<8x384xf32, #tpu.memory_space<vmem>>, vector<8x128xf32>,
    %c0_48 = arith.constant 0 : index
    %c128 = arith.constant 128 : index
    %58 = vector.load %arg18[%c0_48, %c128] : memref<8x384xf32, #tpu.memory_space<vmem>>, vector<8x256xf32>
    tpu.vector_store %arg18[%c0_48, %c128], %23 {strides = array<i32>} : memref<8x384xf32, #tpu.memory_space<vmem>>, vector<8x256xf32>,
    return
  }
  func.func @transform_0(%arg0: i32) -> (i32, i32) {
    %c0_i32 = arith.constant 0 : i32
    %c0_i32_0 = arith.constant 0 : i32
    return %arg0, %c0_i32 : i32, i32
  }
  func.func @transform_1(%arg0: i32) -> (i32, i32) {
    %c0_i32 = arith.constant 0 : i32
    %c0_i32_0 = arith.constant 0 : i32
    return %arg0, %c0_i32 : i32, i32
  }
  func.func @transform_2(%arg0: i32) -> (i32, i32) {
    %c0_i32 = arith.constant 0 : i32
    %c0_i32_0 = arith.constant 0 : i32
    return %arg0, %c0_i32 : i32, i32
  }
  func.func @transform_3(%arg0: i32) -> (i32, i32) {
    %c0_i32 = arith.constant 0 : i32
    %c0_i32_0 = arith.constant 0 : i32
    %c0_i32_1 = arith.constant 0 : i32
    return %c0_i32, %c0_i32_0 : i32, i32
  }
  func.func @transform_4(%arg0: i32) -> (i32, i32) {
    %c0_i32 = arith.constant 0 : i32
    %c0_i32_0 = arith.constant 0 : i32
    %c0_i32_1 = arith.constant 0 : i32
    return %c0_i32, %c0_i32_0 : i32, i32
  }
  func.func @transform_5(%arg0: i32) -> (i32, i32) {
    %c0_i32 = arith.constant 0 : i32
    %c0_i32_0 = arith.constant 0 : i32
    %c0_i32_1 = arith.constant 0 : i32
    return %c0_i32, %c0_i32_0 : i32, i32
  }
  func.func @transform_6(%arg0: i32) -> (i32, i32) {
    %c0_i32 = arith.constant 0 : i32
    %c0_i32_0 = arith.constant 0 : i32
    %c0_i32_1 = arith.constant 0 : i32
    return %c0_i32, %c0_i32_0 : i32, i32
  }
  func.func @transform_7(%arg0: i32) -> (i32, i32) {
    %c0_i32 = arith.constant 0 : i32
    %c0_i32_0 = arith.constant 0 : i32
    %c0_i32_1 = arith.constant 0 : i32
    return %c0_i32, %c0_i32_0 : i32, i32
  }
  func.func @transform_8(%arg0: i32) -> (i32, i32) {
    %c0_i32 = arith.constant 0 : i32
    %c0_i32_0 = arith.constant 0 : i32
    %c0_i32_1 = arith.constant 0 : i32
    return %c0_i32, %c0_i32_0 : i32, i32
  }
  func.func @transform_9(%arg0: i32) -> (i32, i32) {
    %c0_i32 = arith.constant 0 : i32
    %c0_i32_0 = arith.constant 0 : i32
    %c0_i32_1 = arith.constant 0 : i32
    return %c0_i32, %c0_i32_0 : i32, i32
  }
  func.func @transform_10(%arg0: i32) -> (i32, i32) {
    %c0_i32 = arith.constant 0 : i32
    %c0_i32_0 = arith.constant 0 : i32
    %c0_i32_1 = arith.constant 0 : i32
    return %c0_i32, %c0_i32_0 : i32, i32
  }
  func.func @transform_11(%arg0: i32) -> (i32, i32) {
    %c0_i32 = arith.constant 0 : i32
    %c0_i32_0 = arith.constant 0 : i32
    %c0_i32_1 = arith.constant 0 : i32
    return %c0_i32, %c0_i32_0 : i32, i32
  }
  func.func @transform_12(%arg0: i32) -> (i32, i32) {
    %c0_i32 = arith.constant 0 : i32
    %c0_i32_0 = arith.constant 0 : i32
    %c0_i32_1 = arith.constant 0 : i32
    return %c0_i32, %c0_i32_0 : i32, i32
  }
  func.func @transform_13(%arg0: i32) -> (i32, i32) {
    %c0_i32 = arith.constant 0 : i32
    %c0_i32_0 = arith.constant 0 : i32
    %c0_i32_1 = arith.constant 0 : i32
    return %c0_i32, %c0_i32_0 : i32, i32
  }
  func.func @transform_14(%arg0: i32) -> (i32, i32) {
    %c0_i32 = arith.constant 0 : i32
    %c0_i32_0 = arith.constant 0 : i32
    %c0_i32_1 = arith.constant 0 : i32
    return %c0_i32, %c0_i32_0 : i32, i32
  }
  func.func @transform_15(%arg0: i32) -> (i32, i32) {
    %c0_i32 = arith.constant 0 : i32
    %c0_i32_0 = arith.constant 0 : i32
    %c0_i32_1 = arith.constant 0 : i32
    return %c0_i32, %c0_i32_0 : i32, i32
  }
  func.func @transform_16(%arg0: i32) -> (i32, i32) {
    %c0_i32 = arith.constant 0 : i32
    %c0_i32_0 = arith.constant 0 : i32
    %c0_i32_1 = arith.constant 0 : i32
    return %c0_i32, %c0_i32_0 : i32, i32
  }
  func.func @transform_17(%arg0: i32) -> (i32, i32) {
    %c0_i32 = arith.constant 0 : i32
    %c0_i32_0 = arith.constant 0 : i32
    return %arg0, %c0_i32 : i32, i32
  }
}

</mosaic_0001>

<bundles_post_ra>
// kernel: tpu_custom_call.1
= control target key start
LH: loop header
LB: loop body
LE: loop exit
PB: predicated region body
PF: predicated region fallthrough
CT: control target
= control target key end

     0   :  { %s1610_s0 = inlined_call_operand.hbm [shape: f32[8,16], index: 0, kind: input, shape index: {}]   ;;  %s1611_s1 = inlined_call_operand.hbm [shape: f32[8,8], index: 1, kind: input, shape index: {}]   ;;  %s1612_s2 = inlined_call_operand.hbm [shape: f32[8,128], index: 2, kind: input, shape index: {}]   ;;  %s1613_s3 = inlined_call_operand.vmem [shape: f32[8,32], index: 3, kind: input, shape index: {}]   ;;  %s1614_s4 = inlined_call_operand.hbm [shape: f32[16,32], index: 4, kind: input, shape index: {}]   ;;  %s1615_s5 = inlined_call_operand.vmem [shape: f32[1,32], index: 5, kind: input, shape index: {}]   ;;  %s1616_s6 = inlined_call_operand.vmem [shape: f32[32,32], index: 6, kind: input, shape index: {}]   ;;  %s1617_s7 = inlined_call_operand.hbm [shape: f32[1,32], index: 7, kind: input, shape index: {}]   ;;  %s1618_s8 = inlined_call_operand.vmem [shape: f32[32,256], index: 8, kind: input, shape index: {}]   ;;  %s1619_s9 = inlined_call_operand.hbm [shape: f32[1,256], index: 9, kind: input, shape index: {}]   ;;  %s1620_s10 = inlined_call_operand.hbm [shape: f32[8,32], index: 10, kind: input, shape index: {}]   ;;  %s1621_s11 = inlined_call_operand.vmem [shape: f32[128,32], index: 11, kind: input, shape index: {}]   ;;  %s1622_s12 = inlined_call_operand.vmem [shape: f32[1,32], index: 12, kind: input, shape index: {}]   ;;  %s1623_s13 = inlined_call_operand.vmem [shape: f32[32,32], index: 13, kind: input, shape index: {}]   ;;  %s1624_s14 = inlined_call_operand.vmem [shape: f32[1,32], index: 14, kind: input, shape index: {}]   ;;  %s1625_s15 = inlined_call_operand.vmem [shape: f32[32,128], index: 15, kind: input, shape index: {}]   ;;  %s1626_s16 = inlined_call_operand.vmem [shape: f32[1,128], index: 16, kind: input, shape index: {}]   ;;  %s1627_s17 = inlined_call_operand.hbm [shape: f32[8,384], index: 17, kind: output, shape index: {}]  }
   0x1   :  { %1631 = sst [smem:[#allocation20_spill]] %s1610_s0 }
   0x2   :  { %1632 = sst [smem:[#allocation21_spill]] %s1611_s1 }
   0x3   :  { %1633 = sst [smem:[#allocation22_spill]] %s1627_s17 }
   0x4   :  { %22 = vsyncpa [#allocation3], 0 }
   0x5   :  { %23 = vsyncpa [#allocation6], 0 }
   0x6   :  { %24 = vsyncpa [#allocation9], 0 }
   0x7   :  { %25 = vsyncpa [#allocation12], 0 }
   0x8   :  { %26 = vsyncpa [#allocation4], 0  ;;  %s1239_s24 = smov [#allocation5]   ;;  %s1240_s26 = smov [#allocation8]  }
   0x9   :  { %s43_s25 = sshll.u32 %s1239_s24, 4  ;;  %s64_s27 = sshll.u32 %s1240_s26, 4  ;;  %s44_s25 = int_to_ptr.vmem [resolvable:$true] %s43_s25  ;;  %s1342_s27 = int_to_ptr.vmem [resolvable:$true] %s64_s27 }
   0xa   :  { %s1634_s0 = sld [smem:[#allocation21_spill]] }
  0x10   :  { %s1053_s30 = scalar_lea.hbm %s1634_s0, 128 }
  0x11   :  { %p1054_p0 = scmp.ne.s32.totalorder %s1634_s0, %s1053_s30  ;;  %p1057_p1 = scmp.lt.u32.totalorder %s1053_s30, %s1634_s0 }
  0x13   :  { %p1059_p2 = pnand %p1057_p1, %p1054_p0 }
  0x15   :  { %1062 = shalt.err (!%p1059_p2)
}
  0x16   :  { %s1063_s21 = scalar_lea.vmem %s44_s25, 128  ;;  %p1068_p4 = scmp.lt.s32.totalorder %s44_s25, %s44_s25 }
  0x17   :  { %p1064_p3 = scmp.ne.s32.totalorder %s44_s25, %s1063_s21  ;;  %p1069_p5 = scmp.lt.s32.totalorder %s1063_s21, %s1063_s21 }
  0x19   :  { %p1070_p6 = por %p1069_p5, %p1068_p4 }
  0x1b   :  { %p1071_p7 = pnand %p1070_p6, %p1064_p3 }
  0x1d   :  { %1074 = shalt.err (!%p1071_p7)
}
  0x1e   :  { %46 = dma.hbm_to_vmem [thread:$0]  %s1634_s0, 128, %s44_s25, [#allocation6]  }
  0x1f   :  { %s1075_s28 = scalar_lea.hbm %s1614_s4, 256 }
  0x20   :  { %p1076_p8 = scmp.ne.s32.totalorder %s1614_s4, %s1075_s28  ;;  %p1079_p9 = scmp.lt.u32.totalorder %s1075_s28, %s1614_s4 }
  0x22   :  { %p1081_p10 = pnand %p1079_p9, %p1076_p8 }
  0x24   :  { %1084 = shalt.err (!%p1081_p10)
}
  0x25   :  { %s1085_s1 = scalar_lea.vmem %s1342_s27, 256  ;;  %p1090_p12 = scmp.lt.s32.totalorder %s1342_s27, %s1342_s27 }
  0x26   :  { %p1086_p11 = scmp.ne.s32.totalorder %s1342_s27, %s1085_s1  ;;  %p1091_p13 = scmp.lt.s32.totalorder %s1085_s1, %s1085_s1 }
  0x28   :  { %p1092_p0 = por %p1091_p13, %p1090_p12 }
  0x2a   :  { %p1093_p1 = pnand %p1092_p0, %p1086_p11 }
  0x2c   :  { %1096 = shalt.err (!%p1093_p1)
}
  0x2d   :  { %s1241_s25 = smov 128   ;;  %s1242_s0 = smov 8  }
  0x2e   :  { %70 = dma.hbm_to_vmem [thread:$0]  %s1614_s4, 256, %s1342_s27, [#allocation9], %s1241_s25, %s1241_s25, %s1242_s0  }
  0x2f   :  { %s1243_s22 = smov [#allocation11]   ;;  %s1244_s24 = smov [#allocation2]  }
  0x30   :  { %s93_s23 = sshll.u32 %s1243_s22, 4  ;;  %s33_s26 = sshll.u32 %s1244_s24, 4  ;;  %s94_s23 = int_to_ptr.vmem [resolvable:$true] %s93_s23  ;;  %s34_s26 = int_to_ptr.vmem [resolvable:$true] %s33_s26 }
  0x31   :  { %s1097_s18 = scalar_lea.hbm %s1619_s9, 32 }
  0x32   :  { %p1098_p2 = scmp.ne.s32.totalorder %s1619_s9, %s1097_s18  ;;  %p1101_p3 = scmp.lt.u32.totalorder %s1097_s18, %s1619_s9 }
  0x34   :  { %p1103_p4 = pnand %p1101_p3, %p1098_p2 }
  0x36   :  { %1106 = shalt.err (!%p1103_p4)
}
  0x37   :  { %s1107_s4 = scalar_lea.vmem %s94_s23, 32  ;;  %p1112_p6 = scmp.lt.s32.totalorder %s94_s23, %s94_s23 }
  0x38   :  { %p1108_p5 = scmp.ne.s32.totalorder %s94_s23, %s1107_s4  ;;  %p1113_p7 = scmp.lt.s32.totalorder %s1107_s4, %s1107_s4 }
  0x3a   :  { %p1114_p8 = por %p1113_p7, %p1112_p6 }
  0x3c   :  { %p1115_p9 = pnand %p1114_p8, %p1108_p5 }
  0x3e   :  { %1118 = shalt.err (!%p1115_p9)
}
  0x3f   :  { %96 = dma.hbm_to_vmem [thread:$0]  %s1619_s9, 32, %s94_s23, [#allocation12]  }
  0x40   :  { %s1635_s21 = sld [smem:[#allocation20_spill]] }
  0x46   :  { %s1119_s22 = scalar_lea.hbm %s1635_s21, 128 }
  0x47   :  { %p1120_p10 = scmp.ne.s32.totalorder %s1635_s21, %s1119_s22  ;;  %p1123_p11 = scmp.lt.u32.totalorder %s1119_s22, %s1635_s21 }
  0x49   :  { %p1125_p12 = pnand %p1123_p11, %p1120_p10 }
  0x4b   :  { %1128 = shalt.err (!%p1125_p12)
}
  0x4c   :  { %s1129_s18 = scalar_lea.vmem %s34_s26, 128  ;;  %p1134_p0 = scmp.lt.s32.totalorder %s34_s26, %s34_s26 }
  0x4d   :  { %p1130_p13 = scmp.ne.s32.totalorder %s34_s26, %s1129_s18  ;;  %p1135_p1 = scmp.lt.s32.totalorder %s1129_s18, %s1129_s18 }
  0x4f   :  { %p1136_p2 = por %p1135_p1, %p1134_p0 }
  0x51   :  { %p1137_p3 = pnand %p1136_p2, %p1130_p13 }
  0x53   :  { %1140 = shalt.err (!%p1137_p3)
}
  0x54   :  { %36 = dma.hbm_to_vmem [thread:$0]  %s1635_s21, 128, %s34_s26, [#allocation3]  }
  0x55   :  { %s1245_s30 = smov [#allocation7]   ;;  %s1246_s1 = smov [#allocation10]  }
  0x56   :  { %s53_s19 = sshll.u32 %s1245_s30, 4  ;;  %s81_s4 = sshll.u32 %s1246_s1, 4  ;;  %s54_s19 = int_to_ptr.vmem [resolvable:$true] %s53_s19  ;;  %s82_s4 = int_to_ptr.vmem [resolvable:$true] %s81_s4 }
  0x57   :  { %s1141_s0 = scalar_lea.hbm %s1612_s2, 128 }
  0x58   :  { %p1142_p4 = scmp.ne.s32.totalorder %s1612_s2, %s1141_s0  ;;  %p1145_p5 = scmp.lt.u32.totalorder %s1141_s0, %s1612_s2 }
  0x5a   :  { %p1147_p6 = pnand %p1145_p5, %p1142_p4 }
  0x5c   :  { %1150 = shalt.err (!%p1147_p6)
}
  0x5d   :  { %s1151_s26 = scalar_lea.vmem %s54_s19, 128  ;;  %p1156_p8 = scmp.lt.s32.totalorder %s54_s19, %s54_s19 }
  0x5e   :  { %p1152_p7 = scmp.ne.s32.totalorder %s54_s19, %s1151_s26  ;;  %p1157_p9 = scmp.lt.s32.totalorder %s1151_s26, %s1151_s26 }
  0x60   :  { %p1158_p10 = por %p1157_p9, %p1156_p8 }
  0x62   :  { %p1159_p11 = pnand %p1158_p10, %p1152_p7 }
  0x64   :  { %1162 = shalt.err (!%p1159_p11)
}
  0x65   :  { %56 = dma.hbm_to_vmem [thread:$0]  %s1612_s2, 128, %s54_s19, [#allocation6]  }
  0x66   :  { %s1163_s9 = scalar_lea.hbm %s1617_s7, 16 }
  0x67   :  { %p1164_p12 = scmp.ne.s32.totalorder %s1617_s7, %s1163_s9  ;;  %p1167_p13 = scmp.lt.u32.totalorder %s1163_s9, %s1617_s7 }
  0x69   :  { %p1169_p0 = pnand %p1167_p13, %p1164_p12 }
  0x6b   :  { %1172 = shalt.err (!%p1169_p0)
}
  0x6c   :  { %s1173_s25 = scalar_lea.vmem %s82_s4, 16  ;;  %s1177_s0 = scalar_lea.vmem %s82_s4, 32 }
  0x6d   :  { %p1174_p1 = scmp.ne.s32.totalorder %s82_s4, %s1173_s25  ;;  %p1178_p2 = scmp.lt.s32.totalorder %s82_s4, %s82_s4 }
  0x6e   :  { %p1179_p3 = scmp.lt.s32.totalorder %s1177_s0, %s1173_s25 }
  0x70   :  { %p1180_p4 = por %p1179_p3, %p1178_p2 }
  0x72   :  { %p1181_p5 = pnand %p1180_p4, %p1174_p1 }
  0x74   :  { %1184 = shalt.err (!%p1181_p5)
}
  0x75   :  { %84 = dma.hbm_to_vmem [thread:$0]  %s1617_s7, 16, %s82_s4, [#allocation9]  }
  0x76   :  { %s1247_s20 = smov [#allocation13]   ;;  %s1185_s26 = scalar_lea.hbm %s1620_s10, 128 }
  0x77   :  { %s103_s22 = sshll.u32 %s1247_s20, 4  ;;  %p1186_p6 = scmp.ne.s32.totalorder %s1620_s10, %s1185_s26  ;;  %s104_s22 = int_to_ptr.vmem [resolvable:$true] %s103_s22 }
  0x78   :  { %p1189_p7 = scmp.lt.u32.totalorder %s1185_s26, %s1620_s10 }
  0x7a   :  { %p1191_p8 = pnand %p1189_p7, %p1186_p6 }
  0x7c   :  { %1194 = shalt.err (!%p1191_p8)
}
  0x7d   :  { %s1195_s9 = scalar_lea.vmem %s104_s22, 128  ;;  %p1200_p10 = scmp.lt.s32.totalorder %s104_s22, %s104_s22 }
  0x7e   :  { %p1196_p9 = scmp.ne.s32.totalorder %s104_s22, %s1195_s9  ;;  %p1201_p11 = scmp.lt.s32.totalorder %s1195_s9, %s1195_s9 }
  0x80   :  { %p1202_p12 = por %p1201_p11, %p1200_p10 }
  0x82   :  { %p1203_p13 = pnand %p1202_p12, %p1196_p9 }
  0x84   :  { %1206 = shalt.err (!%p1203_p13)
}
  0x85   :  { %106 = dma.hbm_to_vmem [thread:$0]  %s1620_s10, 128, %s104_s22, [#allocation12]  }
  0x86   :  { %1229 = dma.done.wait [#allocation3], 128  }
  0x87   :  { %1230 = vsyncadd [#allocation3], 4294967168 }
  0x88   :  { %1231 = dma.done.wait [#allocation6], 256  }
  0x89   :  { %1232 = vsyncadd [#allocation6], 4294967040 }
  0x8a   :  { %1233 = dma.done.wait [#allocation9], 272  }
  0x8b   :  { %1234 = vsyncadd [#allocation9], 4294967024 }
  0x8c   :  { %1235 = dma.done.wait [#allocation12], 160  }
  0x8d   :  { %1236 = vsyncadd [#allocation12], 4294967136  ;;  %v1248_v0 = vmov 0.0|0.0   ;;  %vm1249_vm0 = vmmov 0   ;;  %v1250_v1 = vmov 0.0   ;;  %v143_v2 = vld [vmem:[#allocation8] sm:$0xff] }
  0x8e   :  { %983 = vmatprep.subr.bf16.mxu0 %v1248_v0  ;;  %902 = vmatprep.mubr.msk.f32.mxu0 %vm1249_vm0, %v1250_v1  ;;  %v144_v3 = vld [vmem:[#allocation8 + $0x8] sm:$0xff]  ;;  %vm145_vm1 = vcmask 130048   ;;  %v1445_v7 = vld [vmem:[#allocation5] sm:$0xff]  ;;  %vm219_vm2 = vcmask 64512   ;;  %v304_v11 = vld [vmem:[%s1616_s6 + $0x10] sm:$0xff]  ;;  %vm313_vm3 = vcmask 261120  }
  0x8f   :  { %986 = vmatprep.subr.bf16.mxu1 %v1248_v0  ;;  %918 = vmatprep.mubr.msk.f32.mxu1 %vm1249_vm0, %v1250_v1  ;;  %v984_v4 = vpack.c.bf16 %v144_v3, %v143_v2  ;;  %v141_v5 = vld [vmem:[#allocation2] sm:$0xff]  ;;  %v303_v9 = vld [vmem:[%s1616_s6 + $0x8] sm:$0xff]  ;;  %v305_v12 = vld [vmem:[%s1616_s6 + $0x18] sm:$0xff]  ;;  %v398_v2 = vlaneseq }
  0x90   :  { %v142_v6 = vld [vmem:[%s1613_s3] sm:$0xff]  ;;  %v990_v13 = vpack.c.bf16 %v305_v12, %v304_v11  ;;  %v389_v14 = vld [vmem:[%s1618_s8 + $0x8] sm:$0xff]  ;;  %v391_v15 = vld [vmem:[%s1618_s8 + $0x18] sm:$0xff] }
  0x91   :  { %985 = vmatpush3.bf16.msra.mxu0 %v984_v4  ;;  %v302_v8 = vld [vmem:[%s1616_s6] sm:$0xff]  ;;  %v992_v17 = vpack.c.bf16 %v391_v15, %v389_v14  ;;  %v390_v18 = vld [vmem:[%s1618_s8 + $0x10] sm:$0xff]  ;;  %v393_v28 = vld [vmem:[%s1618_s8 + $0x28] sm:$0xff]  ;;  %v399_v3 = vshrl.u32 %v398_v2, 7 }
  0x92   :  { %905 = vmatprep.subr.mxu0 %v1250_v1  ;;  %v987_v10 = vpack.c.bf16 %v303_v9, %v302_v8  ;;  %v388_v16 = vld [vmem:[%s1618_s8] sm:$0xff]  ;;  %v395_v29 = vld [vmem:[%s1618_s8 + $0x38] sm:$0xff]  ;;  %v394_v32 = vld [vmem:[%s1618_s8 + $0x30] sm:$0xff] }
  0x93   :  { %v994_v19 = vpack.c.bf16 %v390_v18, %v388_v16  ;;  %v848_v23 = vld [vmem:[%s1615_s5] ss:$0 sm:$0xff]  ;;  %v996_v30 = vpack.c.bf16 %v395_v29, %v393_v28  ;;  %v491_v35 = vld [vmem:[%s1621_s11 + $0x8] sm:$0xff]  ;;  %v492_v36 = vld [vmem:[%s1621_s11 + $0x10] sm:$0xff]  ;;  %v400_v4 = vsub.s32 0, %v399_v3 }
  0x94   :  { %903 = vmatmul.mubr.msk.f32.vlgmr.msra.gmra.mrb[0].mxu0 %vm145_vm1, %v141_v5  ;;  %988 = vmatpush3.bf16.msra.mxu1 %v987_v10  ;;  %v392_v31 = vld [vmem:[%s1618_s8 + $0x20] sm:$0xff]  ;;  %v493_v38 = vld [vmem:[%s1621_s11 + $0x18] sm:$0xff]  ;;  %v849_v40 = vld [vmem:[#allocation10] ss:$0 sm:$0xff] }
  0x95   :  { %906 = vmatpush3.msra.mxu0 %v142_v6  ;;  %907 = vmatprep.mubr.msk.f32.mxu0 %vm1249_vm0, %v1250_v1  ;;  %v998_v33 = vpack.c.bf16 %v394_v32, %v392_v31  ;;  %v490_v34 = vld [vmem:[%s1621_s11] sm:$0xff]  ;;  %v1004_v39 = vpack.c.bf16 %v493_v38, %v492_v36  ;;  %v495_v46 = vld [vmem:[%s1621_s11 + $0x28] sm:$0xff]  ;;  %v496_v48 = vld [vmem:[%s1621_s11 + $0x30] sm:$0xff]  ;;  %v404_v6 = vsub.s32 1, %v399_v3 }
  0x96   :  { %989 = vmatprep.subr.bf16.mxu1 %v1248_v0  ;;  %993 = vmatprep.subr.bf16.mxu0 %v992_v17  ;;  %v1001_v37 = vpack.c.bf16 %v491_v35, %v490_v34  ;;  %v494_v45 = vld [vmem:[%s1621_s11 + $0x20] sm:$0xff]  ;;  %v497_v49 = vld [vmem:[%s1621_s11 + $0x38] sm:$0xff]  ;;  %v499_v52 = vld [vmem:[%s1621_s11 + $0x48] sm:$0xff] }
  0x97   :  { %v1007_v47 = vpack.c.bf16 %v495_v46, %v494_v45  ;;  %v1010_v50 = vpack.c.bf16 %v497_v49, %v496_v48  ;;  %v498_v51 = vld [vmem:[%s1621_s11 + $0x40] sm:$0xff]  ;;  %v500_v54 = vld [vmem:[%s1621_s11 + $0x50] sm:$0xff]  ;;  %v501_v55 = vld [vmem:[%s1621_s11 + $0x58] sm:$0xff] }
  0x98   :  { %908 = vmatmul.mubr.msk.f32.vlgmr.msra.gmra.mrb[2].mxu0 %vm219_vm2, %v1445_v7  ;;  %991 = vmatpush3.bf16.msra.mxu1 %v990_v13  ;;  %v1013_v53 = vpack.c.bf16 %v499_v52, %v498_v51  ;;  %v1016_v56 = vpack.c.bf16 %v501_v55, %v500_v54  ;;  %v489_v57 = vld [vmem:[#allocation13] sm:$0xff]  ;;  %v502_v58 = vld [vmem:[%s1621_s11 + $0x60] sm:$0xff]  ;;  %v505_v62 = vld [vmem:[%s1621_s11 + $0x78] sm:$0xff] }
  0x99   :  { %475 = vmatprep.mubr.f32.mxu0 %v1250_v1  ;;  %1000 = vmatprep.subr.bf16.mxu1 %v1248_v0  ;;  %v503_v59 = vld [vmem:[%s1621_s11 + $0x68] sm:$0xff]  ;;  %v504_v61 = vld [vmem:[%s1621_s11 + $0x70] sm:$0xff]  ;;  %v854_v28 = vld [vmem:[%s1622_s12] ss:$0 sm:$0xff] }
  0x9a   :  { %995 = vmatpush1.bf16.msra.mxu0 %v994_v19  ;;  %v1019_v60 = vpack.c.bf16 %v503_v59, %v502_v58  ;;  %v1022_v63 = vpack.c.bf16 %v505_v62, %v504_v61  ;;  %v396_v5 = vld [vmem:[#allocation11] sm:$0x3]  ;;  %v484_v14 = vld [vmem:[#allocation7] sm:$0xff]  ;;  %v655_v19 = vld [vmem:[%s1623_s13] sm:$0xff] }
  0x9b   :  { %997 = vmatprep.subr.bf16.mxu0 %v996_v30  ;;  %v405_v8 = vrot.slane %v396_v5, %v404_v6  ;;  %v740_v31 = vld [vmem:[%s1625_s15] sm:$0xff]  ;;  %v741_v32 = vld [vmem:[%s1625_s15 + $0x8] sm:$0xff]  ;;  %v742_v36 = vld [vmem:[%s1625_s15 + $0x10] sm:$0xff] }
  0x9c   :  { %v1031_v34 = vpack.c.bf16 %v741_v32, %v740_v31 }
  0x9e   :  { %999 = vmatpush1.bf16.msra.mxu0 %v998_v33 }
  0x9f   :  { %956 = vmatprep.subr.mxu0 %v1250_v1 }
 0x167   :  { %v215_v20 = vpop.f32.mrb[0].mxu0 }
 0x168   :  { %v904_v21 = vpop.f32.mrb[1].mxu0 }
 0x16b   :  { %v289_v22 = vpop.f32.mrb[2].mxu0 }
 0x16c   :  { %v290_v24 = vadd.f32 %v289_v22, %v215_v20  ;;  %v909_v25 = vpop.f32.mrb[3].mxu0  ;;  %v656_v20 = vld [vmem:[%s1623_s13 + $0x8] sm:$0xff] }
 0x16d   :  { %v1025_v21 = vpack.c.bf16 %v656_v20, %v655_v19  ;;  %v658_v25 = vld [vmem:[%s1623_s13 + $0x18] sm:$0xff] }
 0x16e   :  { %v300_v26 = vadd.f32 %v848_v23, %v290_v24  ;;  %v657_v24 = vld [vmem:[%s1623_s13 + $0x10] sm:$0xff] }
 0x170   :  { %v301_v27 = vmax.f32 %v300_v26, 0.0  ;;  %v1028_v26 = vpack.c.bf16 %v658_v25, %v657_v24 }
 0x172   :  { %919 = vmatmul.mubr.msk.f32.vlgmr.msra.gmra.mrb[0].mxu1 %vm313_vm3, %v301_v27 }
 0x173   :  { %953 = vmatprep.mubr.msk.f32.mxu1 %vm1249_vm0, %v1250_v1  ;;  %1002 = vmatpush3.bf16.msra.mxu1 %v1001_v37  ;;  %v743_v37 = vld [vmem:[%s1625_s15 + $0x18] sm:$0xff]  ;;  %s1251_s15 = smov [#allocation14]  }
 0x174   :  { %1003 = vmatprep.subr.bf16.mxu1 %v1248_v0  ;;  %v1034_v38 = vpack.c.bf16 %v743_v37, %v742_v36  ;;  %s834_s25 = sshll.u32 %s1251_s15, 4  ;;  %s835_s25 = int_to_ptr.vmem [resolvable:$true] %s834_s25 }
 0x175   :  { %p1212_p1 = scmp.lt.s32.totalorder %s835_s25, %s835_s25 }
 0x177   :  { %1005 = vmatpush3.bf16.msra.mxu1 %v1004_v39  ;;  %v855_v39 = vld [vmem:[%s1624_s14] ss:$0 sm:$0xff]  ;;  %s1207_s14 = scalar_lea.vmem %s835_s25, 384 }
 0x178   :  { %1006 = vmatprep.subr.bf16.mxu1 %v1248_v0  ;;  %p1208_p0 = scmp.ne.s32.totalorder %s835_s25, %s1207_s14  ;;  %p1213_p2 = scmp.lt.s32.totalorder %s1207_s14, %s1207_s14 }
 0x17a   :  { %p1214_p3 = por %p1213_p2, %p1212_p1 }
 0x17b   :  { %1008 = vmatpush3.bf16.msra.mxu1 %v1007_v47 }
 0x17c   :  { %1009 = vmatprep.subr.bf16.mxu1 %v1248_v0  ;;  %p1215_p4 = pnand %p1214_p3, %p1208_p0 }
 0x17f   :  { %1011 = vmatpush3.bf16.msra.mxu1 %v1010_v50 }
 0x180   :  { %1012 = vmatprep.subr.bf16.mxu1 %v1248_v0 }
 0x183   :  { %1014 = vmatpush3.bf16.msra.mxu1 %v1013_v53 }
 0x184   :  { %1015 = vmatprep.subr.bf16.mxu1 %v1248_v0 }
 0x187   :  { %1017 = vmatpush3.bf16.msra.mxu1 %v1016_v56 }
 0x188   :  { %1018 = vmatprep.subr.bf16.mxu1 %v1248_v0 }
 0x18b   :  { %1020 = vmatpush3.bf16.msra.mxu1 %v1019_v60 }
 0x18c   :  { %1021 = vmatprep.subr.bf16.mxu1 %v1248_v0 }
 0x18f   :  { %1023 = vmatpush3.bf16.msra.mxu1 %v1022_v63 }
 0x245   :  { %v383_v41 = vpop.f32.mrb[0].mxu1 }
 0x246   :  { %v384_v42 = vadd.f32 %v849_v40, %v383_v41  ;;  %v920_v43 = vpop.f32.mrb[1].mxu1 }
 0x248   :  { %v387_v44 = vmax.f32 %v384_v42, 0.0 }
 0x24a   :  { %851 = vmatmul.mubr.msk.f32.vlgmr.msra.gmra.mrb[4].mxu0 %vm313_vm3, %v387_v44 }
 0x24b   :  { %958 = vmatprep.mubr.msk.f32.mxu0 %vm1249_vm0, %v1250_v1  ;;  %957 = vmatpush3.msra.mxu0 %v489_v57 }
 0x24c   :  { %1024 = vmatprep.subr.bf16.mxu0 %v1248_v0 }
 0x24e   :  { %959 = vmatmul.mubr.msk.f32.vlgmr.msra.gmra.mrb[6].mxu0 %vm219_vm2, %v1445_v7  ;;  %v401_v7 = vrot.slane %v396_v5, %v400_v4 }
 0x24f   :  { %969 = vmatprep.mubr.msk.f32.mxu0 %vm1249_vm0, %v1250_v1  ;;  %1026 = vmatpush3.bf16.msra.mxu0 %v1025_v21 }
 0x250   :  { %1027 = vmatprep.subr.bf16.mxu0 %v1248_v0 }
 0x253   :  { %1029 = vmatpush3.bf16.msra.mxu0 %v1028_v26 }
 0x254   :  { %1030 = vmatprep.subr.bf16.mxu0 %v1248_v0 }
 0x31d   :  { %v477_v9 = vpop.f32.mrb[4].mxu0 }
 0x31e   :  { %v478_v10 = vadd.f32 %v477_v9, %v401_v7  ;;  %v479_v11 = vpop.f32.mrb[5].mxu0 }
 0x31f   :  { %v480_v12 = vadd.f32 %v479_v11, %v405_v8 }
 0x320   :  { %826 = vst [vmem:[#allocation14 + $0x8] sm:$0xff] %v478_v10 }
 0x321   :  { %v482_v13 = vmul.f32 1.442695, %v480_v12  ;;  %827 = vst [vmem:[#allocation14 + $0x10] sm:$0xff] %v480_v12  ;;  %v642_v22 = vpop.f32.mrb[6].mxu0 }
 0x322   :  { %v960_v23 = vpop.f32.mrb[7].mxu0 }
 0x323   :  { %1049 = vpow2.f32 %v482_v13 }
 0x32d   :  { %v1050_v15 = vpop.eup %1049 }
 0x32e   :  { %v485_v16 = vmul.f32 %v1050_v15, %v484_v14 }
 0x330   :  { %v486_v17 = vadd.f32 %v485_v16, %v478_v10 }
 0x332   :  { %v852_v18 = vclamps-f32 %v486_v17, 1.0 }
 0x334   :  { %954 = vmatmul.mubr.f32.vlgmr.msra.gmra.mrb[2].mxu1 %v852_v18 }
 0x407   :  { %v572_v27 = vpop.f32.mrb[2].mxu1 }
 0x408   :  { %v643_v29 = vadd.f32 %v642_v22, %v572_v27  ;;  %v955_v30 = vpop.f32.mrb[3].mxu1 }
 0x40a   :  { %v653_v33 = vadd.f32 %v854_v28, %v643_v29 }
 0x40c   :  { %v654_v35 = vmax.f32 %v653_v33, 0.0 }
 0x40e   :  { %970 = vmatmul.mubr.msk.f32.vlgmr.msra.gmra.mrb[8].mxu0 %vm313_vm3, %v654_v35 }
 0x40f   :  { %1032 = vmatpush3.bf16.msra.mxu0 %v1031_v34  ;;  %980 = vmatprep.mubr.msk.f32.mxu0 %vm1249_vm0, %v1250_v1 }
 0x410   :  { %1033 = vmatprep.subr.bf16.mxu0 %v1248_v0  ;;  %v857_v0 = vld [vmem:[%s1626_s16] ss:$0 sm:$0xff] }
 0x413   :  { %1035 = vmatpush3.bf16.msra.mxu0 %v1034_v38 }
 0x4e1   :  { %v735_v40 = vpop.f32.mrb[8].mxu0 }
 0x4e2   :  { %v736_v41 = vadd.f32 %v855_v39, %v735_v40  ;;  %v971_v42 = vpop.f32.mrb[9].mxu0 }
 0x4e4   :  { %v739_v1 = vmax.f32 %v736_v41, 0.0 }
 0x4e6   :  { %981 = vmatmul.mubr.msk.f32.vlgmr.msra.gmra.mrb[10].mxu0 %vm313_vm3, %v739_v1 }
 0x5b9   :  { %v820_v43 = vpop.f32.mrb[10].mxu0 }
 0x5ba   :  { %v821_v44 = vadd.f32 %v857_v0, %v820_v43  ;;  %v982_v45 = vpop.f32.mrb[11].mxu0 }
 0x5bc   :  { %1051 = vtanh.f32 %v821_v44 }
 0x5c6   :  { %v1052_v46 = vpop.eup %1051 }
 0x5c7   :  { %825 = vst [vmem:[#allocation14] sm:$0xff] %v1052_v46 }
 0x5c8   :  { %1218 = shalt.err (!%p1215_p4)
}
 0x5c9   :  { %s1636_s2 = sld [smem:[#allocation22_spill]] }
 0x5cf   :  { %s1219_s16 = scalar_lea.hbm %s1636_s2, 384 }
 0x5d0   :  { %p1220_p5 = scmp.ne.s32.totalorder %s1636_s2, %s1219_s16  ;;  %p1223_p6 = scmp.lt.u32.totalorder %s1219_s16, %s1636_s2 }
 0x5d2   :  { %p1225_p7 = pnand %p1223_p6, %p1220_p5 }
 0x5d4   :  { %1228 = shalt.err (!%p1225_p7)
}
 0x5d5   :  { %837 = dma.vmem_to_hbm [thread:$0]  %s835_s25, 384, %s1636_s2, [#allocation4]  }
 0x5d6   :  { %1237 = dma.done.wait [#allocation4], 384  }
 0x5d7   :  { %1238 = vsyncadd [#allocation4], 4294966912 }
 0x5d8   :  { %841 = vsyncpa [#allocation3], 1 }
 0x5d9   :  { %842 = vsyncpa [#allocation6], 1 }
 0x5da   :  { %843 = vsyncpa [#allocation9], 1 }
 0x5db   :  { %844 = vsyncpa [#allocation12], 1 }
 0x5dc   :  { %845 = vsyncpa [#allocation4], 1 }

</bundles_post_ra>
